<compile_context>
chip_gen: v5e
topology: v5e:2x2
jax: 0.10.0
libtpu: 0.0.40
codegen_flags: <defaults>
</compile_context>

<pallas_src>
import functools

import jax
import jax.numpy as jnp
from jax.experimental import pallas as pl
from jax.experimental.pallas import tpu as pltpu

HIDDEN = 32
SENTI = 7
H1 = 100
NCLASS = 6
H1P = 128          # H1 padded to a full lane width
OUT_LANES = 128    # classes padded to a full lane width (sliced to 6 in the wrapper)
NEG_INF = -1e30


def _round_up(x, m):
    return (x + m - 1) // m * m


def output_kernel(enc_ref, mask_ref, senti_ref,
                  wscore_ref, rexp_ref, w1big_ref, w1b_ref, b1_ref, w2_ref,
                  out_ref):
    enc = enc_ref[...].astype(jnp.float32)        # (TB, S*H)  lane-dense
    mask = mask_ref[...].astype(jnp.float32)      # (TB, S)
    senti = senti_ref[...].astype(jnp.float32)    # (TB, 7)

    # ---- WeightedSum scoring: one dense MXU matmul (K = S*H) ----
    # wscore is block-diagonal kron(eye(S), watt) so scores[b, s] = <enc[b, s, :], watt>.
    scores = jnp.dot(enc, wscore_ref[...], preferred_element_type=jnp.float32)  # (TB, S)
    scores = jnp.where(mask > 0.0, scores, NEG_INF)

    # ---- masked softmax over the (tiny) sequence axis ----
    m = jnp.max(scores, axis=-1, keepdims=True)
    e = jnp.exp(scores - m)
    denom = jnp.sum(e, axis=-1, keepdims=True)
    alpha = e * pl.reciprocal(denom, approx=True)                               # (TB, S)

    # ---- weighted pooling folded into the h1 matmul (no 3-D tensors, no XLU reduce) --
    # alpha_rep[b, s*H+h] = alpha[b, s]   (MXU expand via 0/1 matrix)
    alpha_rep = jnp.dot(alpha, rexp_ref[...], preferred_element_type=jnp.float32)
    prod = alpha_rep * enc                                                      # (TB, S*H)

    # h1 = weighted @ W1a + senti @ W1b + b1
    # (W1a is pre-tiled into w1big so sum over (s, h) == sum over h of weighted.)
    h1 = (jnp.dot(prod, w1big_ref[...], preferred_element_type=jnp.float32)
          + jnp.dot(senti, w1b_ref[...], preferred_element_type=jnp.float32)
          + b1_ref[...])                                                        # (TB, 128)
    h1 = jnp.maximum(h1, 0.0)                                                   # ReLU

    # ---- h2_layer (no bias), classes padded to 128 lanes ----
    h2 = jnp.dot(h1, w2_ref[...], preferred_element_type=jnp.float32)           # (TB, 128)
    lane = jax.lax.broadcasted_iota(jnp.int32, h2.shape, 1)
    h2 = jnp.where(lane < NCLASS, h2, NEG_INF)   # padded lanes don't affect logsumexp

    # ---- LogSoftmax(dim=1) over the 6 real classes ----
    m2 = jnp.max(h2, axis=-1, keepdims=True)
    lse = jnp.log(jnp.sum(jnp.exp(h2 - m2), axis=-1, keepdims=True)) + m2
    out_ref[...] = (h2 - lse).astype(out_ref.dtype)                             # lane-dense


def output_forward(enc_output, norm_senti, context_mask, params, *, block_b=None):
    B, S, H = enc_output.shape
    assert H == HIDDEN
    assert norm_senti.shape == (B, SENTI)
    assert context_mask.shape == (B, S)

    # ---- weight prep (pure, tiny; runs once in XLA outside the kernel) ----
    watt = params["watt"].reshape(HIDDEN, 1).astype(jnp.float32)     # scoring vector (H, 1)
    w1 = params["w1"].astype(jnp.float32)                            # (H+7, 100), (in, out)
    b1 = params["b1"].astype(jnp.float32)                            # (100,)
    w2 = params["w2"].astype(jnp.float32)                            # (100, 6), (in, out)

    w1a, w1b = w1[:HIDDEN], w1[HIDDEN:]                              # (H, 100), (7, 100)
    w1a_p = jnp.pad(w1a, ((0, 0), (0, H1P - H1)))                    # (H, 128)
    w1b_p = jnp.pad(w1b, ((0, 0), (0, H1P - H1)))                    # (7, 128)
    b1_p = jnp.pad(b1.reshape(1, H1), ((0, 0), (0, H1P - H1)))       # (1, 128)
    w2_p = jnp.pad(w2, ((0, H1P - H1), (0, OUT_LANES - NCLASS)))     # (128, 128)

    eye_s = jnp.eye(S, dtype=jnp.float32)
    wscore = jnp.kron(eye_s, watt)                                   # (S*H, S) block-diag scorer
    rexp = jnp.kron(eye_s, jnp.ones((1, HIDDEN), jnp.float32))       # (S, S*H) 0/1 expand
    w1big = jnp.tile(w1a_p, (S, 1))                                  # (S*H, 128)

    enc2 = enc_output.reshape(B, S * H).astype(jnp.float32)          # lane-dense slab
    mask = context_mask.astype(jnp.float32)
    senti = norm_senti.astype(jnp.float32)

    # ---- batch tiling (generation-safe: fits v7x's 64 MiB VMEM / 32 MiB scoped) ----
    if block_b is None:
        per_buf_budget = 4 * 1024 * 1024                 # per enc input buffer
        row_bytes = S * H * 4
        block_b = max(8, min(1024, per_buf_budget // max(row_bytes, 1)))
    block_b = max(8, (block_b // 8) * 8)
    TB = min(block_b, _round_up(B, 8))
    Bp = _round_up(B, TB)

    pad_b = Bp - B
    if pad_b:
        enc2 = jnp.pad(enc2, ((0, pad_b), (0, 0)))
        mask = jnp.pad(mask, ((0, pad_b), (0, 0)))
        senti = jnp.pad(senti, ((0, pad_b), (0, 0)))

    grid = (Bp // TB,)
    batch_spec = lambda bs: pl.BlockSpec(bs, lambda i: (i, 0))
    const_spec = lambda bs: pl.BlockSpec(bs, lambda i: (0, 0))

    out = pl.pallas_call(
        output_kernel,
        out_shape=jax.ShapeDtypeStruct((Bp, OUT_LANES), jnp.float32),
        grid=grid,
        in_specs=[
            batch_spec((TB, S * H)),          # enc2
            batch_spec((TB, S)),              # mask
            batch_spec((TB, SENTI)),          # senti
            const_spec((S * H, S)),           # wscore   (resident)
            const_spec((S, S * H)),           # rexp     (resident)
            const_spec((S * H, H1P)),         # w1big    (resident)
            const_spec((SENTI, H1P)),         # w1b      (resident)
            const_spec((1, H1P)),             # b1       (resident)
            const_spec((H1P, OUT_LANES)),     # w2       (resident)
        ],
        out_specs=batch_spec((TB, OUT_LANES)),
        compiler_params=pltpu.CompilerParams(
            dimension_semantics=("parallel",),
            vmem_limit_bytes=32 * 1024 * 1024,
        ),
    )(enc2, mask, senti, wscore, rexp, w1big, w1b_p, b1_p, w2_p)

    return out[:B, :NCLASS]


def init_params(key):
    k1, k2, k3, k4 = jax.random.split(key, 4)
    watt = jax.random.normal(k1, (1, HIDDEN), jnp.float32) * 0.1         # WeightedSum scorer
    w1 = jax.random.normal(k2, (HIDDEN + SENTI, H1), jnp.float32) * 0.1  # h1_layer weight (in, out)
    b1 = jax.random.normal(k3, (H1,), jnp.float32) * 0.1                 # h1_layer bias
    w2 = jax.random.normal(k4, (H1, NCLASS), jnp.float32) * 0.1          # h2_layer weight (in, out)
    return {"watt": watt, "w1": w1, "b1": b1, "w2": w2}


if __name__ == "__main__":
    B, S = 2, 8
    key = jax.random.PRNGKey(0)
    k_enc, k_senti, k_params = jax.random.split(key, 3)

    enc_output = jax.random.normal(k_enc, (B, S, HIDDEN), jnp.float32)
    norm_senti = jax.random.normal(k_senti, (B, SENTI), jnp.float32)
    # batch 0: all 8 tokens valid; batch 1: first 5 valid, last 3 padded
    context_mask = jnp.array(
        [[1.0] * S,
         [1.0] * 5 + [0.0] * 3], dtype=jnp.float32)

    params = init_params(k_params)

    out = output_forward(enc_output, norm_senti, context_mask, params)
    out = jax.block_until_ready(out)
    assert out.shape == (B, NCLASS)
    assert bool(jnp.all(jnp.isfinite(out)))
    # log-softmax rows should (approximately) sum to 1 in probability space
    assert bool(jnp.all(jnp.abs(jnp.sum(jnp.exp(out), axis=-1) - 1.0) < 1e-3))
    print("KERNEL_OK")
</pallas_src>

<mosaic_0001>
module attributes {stable_mosaic.version = 11 : i64} {
  func.func @output_kernel(%arg0: i32, %arg1: memref<8x256xf32, #tpu.memory_space<vmem>>, %arg2: memref<8x8xf32, #tpu.memory_space<vmem>>, %arg3: memref<8x7xf32, #tpu.memory_space<vmem>>, %arg4: memref<256x8xf32, #tpu.memory_space<vmem>>, %arg5: memref<8x256xf32, #tpu.memory_space<vmem>>, %arg6: memref<256x128xf32, #tpu.memory_space<vmem>>, %arg7: memref<7x128xf32, #tpu.memory_space<vmem>>, %arg8: memref<1x128xf32, #tpu.memory_space<vmem>>, %arg9: memref<128x128xf32, #tpu.memory_space<vmem>>, %arg10: memref<8x128xf32, #tpu.memory_space<vmem>>) attributes {dimension_semantics = [#tpu.dimension_semantics<parallel>], iteration_bounds = array<i64: 1>, scalar_prefetch = 0 : i64, scratch_operands = 0 : i64, tpu.core_type = #tpu.core_type<tc>, window_params = [{transform_indices = @transform_0, window_bounds = array<i64: 8, 256>}, {transform_indices = @transform_1, window_bounds = array<i64: 8, 8>}, {transform_indices = @transform_2, window_bounds = array<i64: 8, 7>}, {pipeline_mode = #tpu.pipeline_mode<synchronous>, transform_indices = @transform_3, window_bounds = array<i64: 256, 8>}, {pipeline_mode = #tpu.pipeline_mode<synchronous>, transform_indices = @transform_4, window_bounds = array<i64: 8, 256>}, {pipeline_mode = #tpu.pipeline_mode<synchronous>, transform_indices = @transform_5, window_bounds = array<i64: 256, 128>}, {pipeline_mode = #tpu.pipeline_mode<synchronous>, transform_indices = @transform_6, window_bounds = array<i64: 7, 128>}, {pipeline_mode = #tpu.pipeline_mode<synchronous>, transform_indices = @transform_7, window_bounds = array<i64: 1, 128>}, {pipeline_mode = #tpu.pipeline_mode<synchronous>, transform_indices = @transform_8, window_bounds = array<i64: 128, 128>}, {transform_indices = @transform_9, window_bounds = array<i64: 8, 128>}]} {
    %c0 = arith.constant 0 : index
    %c0_0 = arith.constant 0 : index
    %0 = vector.load %arg1[%c0, %c0_0] : memref<8x256xf32, #tpu.memory_space<vmem>>, vector<8x256xf32>
    %c0_1 = arith.constant 0 : index
    %c0_2 = arith.constant 0 : index
    %1 = vector.load %arg2[%c0_1, %c0_2] : memref<8x8xf32, #tpu.memory_space<vmem>>, vector<8x8xf32>
    %c0_3 = arith.constant 0 : index
    %c0_4 = arith.constant 0 : index
    %2 = vector.load %arg3[%c0_3, %c0_4] : memref<8x7xf32, #tpu.memory_space<vmem>>, vector<8x7xf32>
    %c0_5 = arith.constant 0 : index
    %c0_6 = arith.constant 0 : index
    %3 = vector.load %arg4[%c0_5, %c0_6] : memref<256x8xf32, #tpu.memory_space<vmem>>, vector<256x8xf32>
    %cst = arith.constant dense<0.000000e+00> : vector<8x8xf32>
    %4 = tpu.matmul %0, %3, %cst {dimension_numbers = #tpu.dot_dimension_numbers<[1], [0], [0], [1], [0, 0, 1, 1], [], []>} : vector<8x256xf32>, vector<256x8xf32>, vector<8x8xf32> -> vector<8x8xf32>
    %cst_7 = arith.constant 0.000000e+00 : f32
    %5 = vector.broadcast %cst_7 : f32 to vector<8x8xf32>
    %6 = arith.cmpf ogt, %1, %5 : vector<8x8xf32>
    %cst_8 = arith.constant -1.000000e+30 : f32
    %7 = vector.broadcast %cst_8 : f32 to vector<8x8xf32>
    %8 = arith.select %6, %4, %7 : vector<8x8xi1>, vector<8x8xf32>
    %cst_9 = arith.constant dense<0xFF800000> : vector<8xf32>
    %9 = vector.multi_reduction <maximumf>, %8, %cst_9 [1] : vector<8x8xf32> to vector<8xf32>
    %10 = vector.shape_cast %9 : vector<8xf32> to vector<8x1xf32>
    %11 = vector.broadcast %10 : vector<8x1xf32> to vector<8x8xf32>
    %12 = arith.subf %8, %11 : vector<8x8xf32>
    %13 = math.exp %12 : vector<8x8xf32>
    %cst_10 = arith.constant dense<0.000000e+00> : vector<8xf32>
    %14 = vector.multi_reduction <add>, %13, %cst_10 [1] : vector<8x8xf32> to vector<8xf32>
    %15 = vector.shape_cast %14 : vector<8xf32> to vector<8x1xf32>
    %16 = tpu.reciprocal %15 {approx = true} : vector<8x1xf32> -> vector<8x1xf32>
    %17 = vector.broadcast %16 : vector<8x1xf32> to vector<8x8xf32>
    %18 = arith.mulf %13, %17 : vector<8x8xf32>
    %c0_11 = arith.constant 0 : index
    %c0_12 = arith.constant 0 : index
    %19 = vector.load %arg5[%c0_11, %c0_12] : memref<8x256xf32, #tpu.memory_space<vmem>>, vector<8x256xf32>
    %cst_13 = arith.constant dense<0.000000e+00> : vector<8x256xf32>
    %20 = tpu.matmul %18, %19, %cst_13 {dimension_numbers = #tpu.dot_dimension_numbers<[1], [0], [0], [1], [0, 0, 1, 1], [], []>} : vector<8x8xf32>, vector<8x256xf32>, vector<8x256xf32> -> vector<8x256xf32>
    %21 = arith.mulf %20, %0 : vector<8x256xf32>
    %c0_14 = arith.constant 0 : index
    %c0_15 = arith.constant 0 : index
    %22 = vector.load %arg6[%c0_14, %c0_15] : memref<256x128xf32, #tpu.memory_space<vmem>>, vector<256x128xf32>
    %cst_16 = arith.constant dense<0.000000e+00> : vector<8x128xf32>
    %23 = tpu.matmul %21, %22, %cst_16 {dimension_numbers = #tpu.dot_dimension_numbers<[1], [0], [0], [1], [0, 0, 1, 1], [], []>} : vector<8x256xf32>, vector<256x128xf32>, vector<8x128xf32> -> vector<8x128xf32>
    %c0_17 = arith.constant 0 : index
    %c0_18 = arith.constant 0 : index
    %24 = vector.load %arg7[%c0_17, %c0_18] : memref<7x128xf32, #tpu.memory_space<vmem>>, vector<7x128xf32>
    %cst_19 = arith.constant dense<0.000000e+00> : vector<8x128xf32>
    %25 = tpu.matmul %2, %24, %cst_19 {dimension_numbers = #tpu.dot_dimension_numbers<[1], [0], [0], [1], [0, 0, 1, 1], [], []>} : vector<8x7xf32>, vector<7x128xf32>, vector<8x128xf32> -> vector<8x128xf32>
    %26 = arith.addf %23, %25 : vector<8x128xf32>
    %c0_20 = arith.constant 0 : index
    %c0_21 = arith.constant 0 : index
    %27 = vector.load %arg8[%c0_20, %c0_21] : memref<1x128xf32, #tpu.memory_space<vmem>>, vector<1x128xf32>
    %28 = vector.broadcast %27 : vector<1x128xf32> to vector<8x128xf32>
    %29 = arith.addf %26, %28 : vector<8x128xf32>
    %cst_22 = arith.constant 0.000000e+00 : f32
    %30 = vector.broadcast %cst_22 : f32 to vector<8x128xf32>
    %31 = arith.maximumf %29, %30 : vector<8x128xf32>
    %c0_23 = arith.constant 0 : index
    %c0_24 = arith.constant 0 : index
    %32 = vector.load %arg9[%c0_23, %c0_24] : memref<128x128xf32, #tpu.memory_space<vmem>>, vector<128x128xf32>
    %cst_25 = arith.constant dense<0.000000e+00> : vector<8x128xf32>
    %33 = tpu.matmul %31, %32, %cst_25 {dimension_numbers = #tpu.dot_dimension_numbers<[1], [0], [0], [1], [0, 0, 1, 1], [], []>} : vector<8x128xf32>, vector<128x128xf32>, vector<8x128xf32> -> vector<8x128xf32>
    %34 = tpu.iota {dimensions = array<i32: 1>} : vector<8x128xi32>
    %c6_i32 = arith.constant 6 : i32
    %35 = vector.broadcast %c6_i32 : i32 to vector<8x128xi32>
    %36 = arith.cmpi slt, %34, %35 : vector<8x128xi32>
    %cst_26 = arith.constant -1.000000e+30 : f32
    %37 = vector.broadcast %cst_26 : f32 to vector<8x128xf32>
    %38 = arith.select %36, %33, %37 : vector<8x128xi1>, vector<8x128xf32>
    %cst_27 = arith.constant dense<0xFF800000> : vector<8xf32>
    %39 = vector.multi_reduction <maximumf>, %38, %cst_27 [1] : vector<8x128xf32> to vector<8xf32>
    %40 = vector.shape_cast %39 : vector<8xf32> to vector<8x1xf32>
    %41 = vector.broadcast %40 : vector<8x1xf32> to vector<8x128xf32>
    %42 = arith.subf %38, %41 : vector<8x128xf32>
    %43 = math.exp %42 : vector<8x128xf32>
    %cst_28 = arith.constant dense<0.000000e+00> : vector<8xf32>
    %44 = vector.multi_reduction <add>, %43, %cst_28 [1] : vector<8x128xf32> to vector<8xf32>
    %45 = vector.shape_cast %44 : vector<8xf32> to vector<8x1xf32>
    %46 = math.log %45 : vector<8x1xf32>
    %47 = arith.addf %46, %40 : vector<8x1xf32>
    %48 = vector.broadcast %47 : vector<8x1xf32> to vector<8x128xf32>
    %49 = arith.subf %38, %48 : vector<8x128xf32>
    %c0_29 = arith.constant 0 : index
    %c0_30 = arith.constant 0 : index
    %50 = vector.load %arg10[%c0_29, %c0_30] : memref<8x128xf32, #tpu.memory_space<vmem>>, vector<8x128xf32>
    tpu.vector_store %arg10[%c0_29, %c0_30], %49 {strides = array<i32>} : memref<8x128xf32, #tpu.memory_space<vmem>>, vector<8x128xf32>,
    return
  }
  func.func @transform_0(%arg0: i32) -> (i32, i32) {
    %c0_i32 = arith.constant 0 : i32
    %c0_i32_0 = arith.constant 0 : i32
    return %arg0, %c0_i32 : i32, i32
  }
  func.func @transform_1(%arg0: i32) -> (i32, i32) {
    %c0_i32 = arith.constant 0 : i32
    %c0_i32_0 = arith.constant 0 : i32
    return %arg0, %c0_i32 : i32, i32
  }
  func.func @transform_2(%arg0: i32) -> (i32, i32) {
    %c0_i32 = arith.constant 0 : i32
    %c0_i32_0 = arith.constant 0 : i32
    return %arg0, %c0_i32 : i32, i32
  }
  func.func @transform_3(%arg0: i32) -> (i32, i32) {
    %c0_i32 = arith.constant 0 : i32
    %c0_i32_0 = arith.constant 0 : i32
    %c0_i32_1 = arith.constant 0 : i32
    return %c0_i32, %c0_i32_0 : i32, i32
  }
  func.func @transform_4(%arg0: i32) -> (i32, i32) {
    %c0_i32 = arith.constant 0 : i32
    %c0_i32_0 = arith.constant 0 : i32
    %c0_i32_1 = arith.constant 0 : i32
    return %c0_i32, %c0_i32_0 : i32, i32
  }
  func.func @transform_5(%arg0: i32) -> (i32, i32) {
    %c0_i32 = arith.constant 0 : i32
    %c0_i32_0 = arith.constant 0 : i32
    %c0_i32_1 = arith.constant 0 : i32
    return %c0_i32, %c0_i32_0 : i32, i32
  }
  func.func @transform_6(%arg0: i32) -> (i32, i32) {
    %c0_i32 = arith.constant 0 : i32
    %c0_i32_0 = arith.constant 0 : i32
    %c0_i32_1 = arith.constant 0 : i32
    return %c0_i32, %c0_i32_0 : i32, i32
  }
  func.func @transform_7(%arg0: i32) -> (i32, i32) {
    %c0_i32 = arith.constant 0 : i32
    %c0_i32_0 = arith.constant 0 : i32
    %c0_i32_1 = arith.constant 0 : i32
    return %c0_i32, %c0_i32_0 : i32, i32
  }
  func.func @transform_8(%arg0: i32) -> (i32, i32) {
    %c0_i32 = arith.constant 0 : i32
    %c0_i32_0 = arith.constant 0 : i32
    %c0_i32_1 = arith.constant 0 : i32
    return %c0_i32, %c0_i32_0 : i32, i32
  }
  func.func @transform_9(%arg0: i32) -> (i32, i32) {
    %c0_i32 = arith.constant 0 : i32
    %c0_i32_0 = arith.constant 0 : i32
    return %arg0, %c0_i32 : i32, i32
  }
}

</mosaic_0001>

<bundles_post_ra>
// kernel: tpu_custom_call.1
= control target key start
LH: loop header
LB: loop body
LE: loop exit
PB: predicated region body
PF: predicated region fallthrough
CT: control target
= control target key end

     0   :  { %14 = vsyncpa [#allocation3], 0  ;;  %s880_s0 = inlined_call_operand.vmem [shape: f32[8,256], index: 0, kind: input, shape index: {}]   ;;  %s881_s1 = inlined_call_operand.hbm [shape: f32[8,8], index: 1, kind: input, shape index: {}]   ;;  %s882_s2 = inlined_call_operand.hbm [shape: f32[8,7], index: 2, kind: input, shape index: {}]   ;;  %s883_s3 = inlined_call_operand.vmem [shape: f32[256,8], index: 3, kind: input, shape index: {}]   ;;  %s884_s4 = inlined_call_operand.hbm [shape: f32[8,256], index: 4, kind: input, shape index: {}]   ;;  %s885_s5 = inlined_call_operand.vmem [shape: f32[256,128], index: 5, kind: input, shape index: {}]   ;;  %s886_s6 = inlined_call_operand.hbm [shape: f32[7,128], index: 6, kind: input, shape index: {}]   ;;  %s887_s7 = inlined_call_operand.vmem [shape: f32[1,128], index: 7, kind: input, shape index: {}]   ;;  %s888_s8 = inlined_call_operand.hbm [shape: f32[128,128], index: 8, kind: input, shape index: {}]   ;;  %s889_s9 = inlined_call_operand.hbm [shape: f32[8,128], index: 9, kind: output, shape index: {}]  }
   0x1   :  { %15 = vsyncpa [#allocation6], 0 }
   0x2   :  { %16 = vsyncpa [#allocation9], 0  ;;  %s36_s11 = sshll.u32 %s882_s2, 4  ;;  %s37_s11 = int_to_ptr.hbm [resolvable:$true] %s36_s11 }
   0x3   :  { %17 = vsyncpa [#allocation4], 0  ;;  %s591_s12 = smov [#allocation5]   ;;  %s62_s16 = sshll.u32 %s886_s6, 4  ;;  %s63_s16 = int_to_ptr.hbm [resolvable:$true] %s62_s16 }
   0x4   :  { %s38_s13 = sshll.u32 %s591_s12, 4  ;;  %s592_s17 = smov [#allocation8]   ;;  %s39_s13 = int_to_ptr.vmem [resolvable:$true] %s38_s13 }
   0x5   :  { %41 = dma.hbm_to_vmem [thread:$0]  %s37_s11, 128, %s39_s13, [#allocation6]  }
   0x6   :  { %s64_s18 = sshll.u32 %s592_s17, 4  ;;  %s25_s21 = sshll.u32 %s881_s1, 4  ;;  %s65_s18 = int_to_ptr.vmem [resolvable:$true] %s64_s18  ;;  %s26_s21 = int_to_ptr.hbm [resolvable:$true] %s25_s21 }
   0x7   :  { %67 = dma.hbm_to_vmem [thread:$0]  %s63_s16, 128, %s65_s18, [#allocation9]  }
   0x8   :  { %s49_s23 = sshll.u32 %s884_s4, 4  ;;  %s593_s24 = smov [#allocation2]   ;;  %s50_s23 = int_to_ptr.hbm [resolvable:$true] %s49_s23 }
   0x9   :  { %s27_s25 = sshll.u32 %s593_s24, 4  ;;  %s594_s6 = smov [#allocation7]   ;;  %s28_s25 = int_to_ptr.vmem [resolvable:$true] %s27_s25 }
   0xa   :  { %30 = dma.hbm_to_vmem [thread:$0]  %s26_s21, 128, %s28_s25, [#allocation3]  }
   0xb   :  { %s51_s26 = sshll.u32 %s594_s6, 4  ;;  %s74_s29 = sshll.u32 %s888_s8, 4  ;;  %s52_s26 = int_to_ptr.vmem [resolvable:$true] %s51_s26  ;;  %s75_s29 = int_to_ptr.hbm [resolvable:$true] %s74_s29 }
   0xc   :  { %54 = dma.hbm_to_vmem [thread:$0]  %s50_s23, 256, %s52_s26, [#allocation6]  }
   0xd   :  { %s595_s1 = smov [#allocation10]   ;;  %s596_s10 = smov 128  }
   0xe   :  { %s76_s30 = sshll.u32 %s595_s1, 4  ;;  %s597_s11 = smov 8   ;;  %s77_s30 = int_to_ptr.vmem [resolvable:$true] %s76_s30 }
   0xf   :  { %82 = dma.hbm_to_vmem [thread:$0]  %s75_s29, 2048, %s77_s30, [#allocation9], %s596_s10, %s596_s10, %s597_s11  }
  0x10   :  { %583 = dma.done.wait [#allocation3], 128  }
  0x11   :  { %584 = vsyncadd [#allocation3], 4294967168 }
  0x12   :  { %585 = dma.done.wait [#allocation6], 384  }
  0x13   :  { %586 = vsyncadd [#allocation6], 4294966912 }
  0x14   :  { %587 = dma.done.wait [#allocation9], 2176  }
  0x15   :  { %588 = vsyncadd [#allocation9], 4294965120  ;;  %v122_v0 = vld [vmem:[%s883_s3 + $0x78] sm:$0xff]  ;;  %v121_v2 = vld [vmem:[%s883_s3 + $0x70] sm:$0xff]  ;;  %vm181_vm1 = vcmask 64512   ;;  %vm277_vm2 = vcmask 1046528  }
  0x16   :  { %v138_v1 = vld [vmem:[%s883_s3 + $0xf8] sm:$0xff]  ;;  %139 = vmatpush.msra.mxu0 %v122_v0  ;;  %v137_v3 = vld [vmem:[%s883_s3 + $0xf0] sm:$0xff]  ;;  %v120_v4 = vld [vmem:[%s883_s3 + $0x68] sm:$0xff]  ;;  %vm273_vm3 = vcmask 56320   ;;  %s406_s4 = sshll.u32 %s889_s9, 4  ;;  %s407_s4 = int_to_ptr.hbm [resolvable:$true] %s406_s4 }
  0x17   :  { %159 = vmatpush.msra.mxu1 %v138_v1  ;;  %v136_v5 = vld [vmem:[%s883_s3 + $0xe8] sm:$0xff]  ;;  %v119_v6 = vld [vmem:[%s883_s3 + $0x60] sm:$0xff]  ;;  %v118_v8 = vld [vmem:[%s883_s3 + $0x58] sm:$0xff] }
  0x18   :  { %140 = vmatpush.msra.mxu0 %v121_v2  ;;  %v135_v7 = vld [vmem:[%s883_s3 + $0xe0] sm:$0xff]  ;;  %v134_v9 = vld [vmem:[%s883_s3 + $0xd8] sm:$0xff]  ;;  %v117_v10 = vld [vmem:[%s883_s3 + $0x50] sm:$0xff] }
  0x19   :  { %160 = vmatpush.msra.mxu1 %v137_v3  ;;  %v133_v11 = vld [vmem:[%s883_s3 + $0xd0] sm:$0xff]  ;;  %v116_v12 = vld [vmem:[%s883_s3 + $0x48] sm:$0xff]  ;;  %v115_v14 = vld [vmem:[%s883_s3 + $0x40] sm:$0xff] }
  0x1a   :  { %141 = vmatpush.msra.mxu0 %v120_v4  ;;  %v132_v13 = vld [vmem:[%s883_s3 + $0xc8] sm:$0xff]  ;;  %v131_v15 = vld [vmem:[%s883_s3 + $0xc0] sm:$0xff]  ;;  %v114_v16 = vld [vmem:[%s883_s3 + $0x38] sm:$0xff] }
  0x1b   :  { %161 = vmatpush.msra.mxu1 %v136_v5  ;;  %v130_v17 = vld [vmem:[%s883_s3 + $0xb8] sm:$0xff]  ;;  %v113_v18 = vld [vmem:[%s883_s3 + $0x30] sm:$0xff]  ;;  %v112_v20 = vld [vmem:[%s883_s3 + $0x28] sm:$0xff] }
  0x1c   :  { %142 = vmatpush.msra.mxu0 %v119_v6  ;;  %v129_v19 = vld [vmem:[%s883_s3 + $0xb0] sm:$0xff]  ;;  %v128_v21 = vld [vmem:[%s883_s3 + $0xa8] sm:$0xff]  ;;  %v111_v22 = vld [vmem:[%s883_s3 + $0x20] sm:$0xff] }
  0x1d   :  { %162 = vmatpush.msra.mxu1 %v135_v7  ;;  %v127_v23 = vld [vmem:[%s883_s3 + $0xa0] sm:$0xff]  ;;  %v110_v24 = vld [vmem:[%s883_s3 + $0x18] sm:$0xff]  ;;  %v109_v26 = vld [vmem:[%s883_s3 + $0x10] sm:$0xff] }
  0x1e   :  { %143 = vmatpush.msra.mxu0 %v118_v8  ;;  %v126_v25 = vld [vmem:[%s883_s3 + $0x98] sm:$0xff]  ;;  %v125_v27 = vld [vmem:[%s883_s3 + $0x90] sm:$0xff]  ;;  %v108_v28 = vld [vmem:[%s883_s3 + $0x8] sm:$0xff] }
  0x1f   :  { %163 = vmatpush.msra.mxu1 %v134_v9  ;;  %v124_v29 = vld [vmem:[%s883_s3 + $0x88] sm:$0xff]  ;;  %v107_v30 = vld [vmem:[%s883_s3] sm:$0xff]  ;;  %v193_v45 = vld [vmem:[#allocation7] sm:$0xff] }
  0x20   :  { %144 = vmatpush.msra.mxu0 %v117_v10  ;;  %v123_v31 = vld [vmem:[%s883_s3 + $0x80] sm:$0xff]  ;;  %v768_v33 = vld [vmem:[%s880_s0 + $0x8] sm:$0xff]  ;;  %v194_v46 = vld [vmem:[#allocation7 + $0x8] sm:$0xff]  ;;  %213 = vmatpush.msra.mxu2 %v193_v45 }
  0x21   :  { %164 = vmatpush.msra.mxu1 %v133_v11  ;;  %v763_v32 = vld [vmem:[%s880_s0] sm:$0xff]  ;;  %233 = vmatpush.msra.mxu3 %v194_v46  ;;  %v255_v48 = vld [vmem:[%s885_s5 + $0x78] sm:$0xff]  ;;  %v254_v49 = vld [vmem:[%s885_s5 + $0x70] sm:$0xff] }
  0x22   :  { %145 = vmatpush.msra.mxu0 %v116_v12  ;;  %v105_v34 = vld [vmem:[#allocation2] sm:$0xff]  ;;  %v253_v50 = vld [vmem:[%s885_s5 + $0x68] sm:$0xff]  ;;  %v251_v52 = vld [vmem:[%s885_s5 + $0x58] sm:$0xff] }
  0x23   :  { %165 = vmatpush.msra.mxu1 %v132_v13  ;;  %vm179_vm0 = vcmp.gt.f32.partialorder %v105_v34, 0.0  ;;  %v272_v47 = vld [vmem:[#allocation8] sm:$0x7f]  ;;  %301 = vmatpush.msrb.mxu3 %v255_v48  ;;  %v250_v53 = vld [vmem:[%s885_s5 + $0x50] sm:$0xff]  ;;  %v249_v54 = vld [vmem:[%s885_s5 + $0x48] sm:$0xff]  ;;  %v383_v48 = vlaneseq }
  0x24   :  { %146 = vmatpush.msra.mxu0 %v115_v14  ;;  %420 = vmatpush.msk.msrb.mxu2 %vm277_vm2, %v272_v47  ;;  %v252_v51 = vld [vmem:[%s885_s5 + $0x60] sm:$0xff]  ;;  %v247_v56 = vld [vmem:[%s885_s5 + $0x38] sm:$0xff]  ;;  %v246_v57 = vld [vmem:[%s885_s5 + $0x30] sm:$0xff] }
  0x25   :  { %166 = vmatpush.msra.mxu1 %v131_v15  ;;  %302 = vmatpush.msrb.mxu3 %v254_v49  ;;  %v248_v55 = vld [vmem:[%s885_s5 + $0x40] sm:$0xff]  ;;  %v245_v58 = vld [vmem:[%s885_s5 + $0x28] sm:$0xff]  ;;  %v243_v61 = vld [vmem:[%s885_s5 + $0x18] sm:$0xff]  ;;  %v384_v49 = vand.u32 127, %v383_v48 }
  0x26   :  { %147 = vmatpush.msra.mxu0 %v114_v16  ;;  %v244_v59 = vld [vmem:[%s885_s5 + $0x20] sm:$0xff]  ;;  %v242_v62 = vld [vmem:[%s885_s5 + $0x10] sm:$0xff]  ;;  %v271_v1 = vld [vmem:[%s885_s5 + $0xf8] sm:$0xff] }
  0x27   :  { %167 = vmatpush.msra.mxu1 %v130_v17  ;;  %303 = vmatpush.msrb.mxu3 %v253_v50  ;;  %v270_v2 = vld [vmem:[%s885_s5 + $0xf0] sm:$0xff]  ;;  %v269_v3 = vld [vmem:[%s885_s5 + $0xe8] sm:$0xff]  ;;  %v268_v4 = vld [vmem:[%s885_s5 + $0xe0] sm:$0xff]  ;;  %vm385_vm4 = vcmp.lt.s32.totalorder %v384_v49, 6 }
  0x28   :  { %148 = vmatpush.msra.mxu0 %v113_v18  ;;  %v106_v5 = vld [vmem:[#allocation5] sm:$0xff]  ;;  %v267_v6 = vld [vmem:[%s885_s5 + $0xd8] sm:$0xff]  ;;  %v266_v7 = vld [vmem:[%s885_s5 + $0xd0] sm:$0xff] }
  0x29   :  { %168 = vmatpush.msra.mxu1 %v129_v19  ;;  %304 = vmatpush.msrb.mxu3 %v252_v51  ;;  %v265_v8 = vld [vmem:[%s885_s5 + $0xc8] sm:$0xff]  ;;  %v264_v9 = vld [vmem:[%s885_s5 + $0xc0] sm:$0xff]  ;;  %v263_v10 = vld [vmem:[%s885_s5 + $0xb8] sm:$0xff] }
  0x2a   :  { %149 = vmatpush.msra.mxu0 %v112_v20  ;;  %v262_v11 = vld [vmem:[%s885_s5 + $0xb0] sm:$0xff]  ;;  %v261_v12 = vld [vmem:[%s885_s5 + $0xa8] sm:$0xff]  ;;  %v260_v13 = vld [vmem:[%s885_s5 + $0xa0] sm:$0xff] }
  0x2b   :  { %169 = vmatpush.msra.mxu1 %v128_v21  ;;  %305 = vmatpush.msrb.mxu3 %v251_v52  ;;  %v259_v14 = vld [vmem:[%s885_s5 + $0x98] sm:$0xff]  ;;  %v258_v15 = vld [vmem:[%s885_s5 + $0x90] sm:$0xff]  ;;  %v241_v16 = vld [vmem:[%s885_s5 + $0x8] sm:$0xff] }
  0x2c   :  { %150 = vmatpush.msra.mxu0 %v111_v22  ;;  %v257_v17 = vld [vmem:[%s885_s5 + $0x88] sm:$0xff]  ;;  %v240_v18 = vld [vmem:[%s885_s5] sm:$0xff]  ;;  %v361_v21 = vld [vmem:[#allocation10 + $0x70] sm:$0xff] }
  0x2d   :  { %170 = vmatpush.msra.mxu1 %v127_v23  ;;  %306 = vmatpush.msrb.mxu3 %v250_v53  ;;  %v256_v19 = vld [vmem:[%s885_s5 + $0x80] sm:$0xff]  ;;  %v360_v22 = vld [vmem:[#allocation10 + $0x68] sm:$0xff]  ;;  %v359_v23 = vld [vmem:[#allocation10 + $0x60] sm:$0xff] }
  0x2e   :  { %151 = vmatpush.msra.mxu0 %v110_v24  ;;  %v362_v20 = vld [vmem:[#allocation10 + $0x78] sm:$0xff] }
  0x2f   :  { %171 = vmatpush.msra.mxu1 %v126_v25  ;;  %307 = vmatpush.msrb.mxu3 %v249_v54  ;;  %v358_v24 = vld [vmem:[#allocation10 + $0x58] sm:$0xff]  ;;  %v357_v25 = vld [vmem:[#allocation10 + $0x50] sm:$0xff] }
  0x30   :  { %152 = vmatpush.msra.mxu0 %v109_v26  ;;  %v356_v26 = vld [vmem:[#allocation10 + $0x48] sm:$0xff] }
  0x31   :  { %172 = vmatpush.msra.mxu1 %v125_v27  ;;  %308 = vmatpush.msrb.mxu3 %v248_v55  ;;  %v355_v27 = vld [vmem:[#allocation10 + $0x40] sm:$0xff] }
  0x32   :  { %153 = vmatpush.msra.mxu0 %v108_v28  ;;  %v354_v28 = vld [vmem:[#allocation10 + $0x38] sm:$0xff] }
  0x33   :  { %173 = vmatpush.msra.mxu1 %v124_v29  ;;  %309 = vmatpush.msrb.mxu3 %v247_v56  ;;  %v353_v29 = vld [vmem:[#allocation10 + $0x30] sm:$0xff] }
  0x34   :  { %154 = vmatpush.msra.mxu0 %v107_v30  ;;  %v352_v30 = vld [vmem:[#allocation10 + $0x28] sm:$0xff] }
  0x35   :  { %174 = vmatpush.msra.mxu1 %v123_v31  ;;  %155 = vmatmul.f32.vlgmr.msra.gmra.mxu0 %v763_v32 }
  0x36   :  { %175 = vmatmul.f32.vlgmr.msra.gmra.mxu1 %v768_v33  ;;  %310 = vmatpush.msrb.mxu3 %v246_v57 }
  0x37   :  { %363 = vmatpush.msrb.mxu0 %v362_v20 }
  0x38   :  { %311 = vmatpush.msrb.mxu3 %v245_v58 }
  0x39   :  { %364 = vmatpush.msrb.mxu0 %v361_v21 }
  0x3a   :  { %312 = vmatpush.msrb.mxu3 %v244_v59 }
  0x3b   :  { %365 = vmatpush.msrb.mxu0 %v360_v22 }
  0x3c   :  { %313 = vmatpush.msrb.mxu3 %v243_v61 }
  0x3d   :  { %366 = vmatpush.msrb.mxu0 %v359_v23 }
  0x3e   :  { %314 = vmatpush.msrb.mxu3 %v242_v62 }
  0x3f   :  { %367 = vmatpush.msrb.mxu0 %v358_v24 }
  0x40   :  { %315 = vmatpush.msrb.mxu3 %v241_v16 }
  0x41   :  { %368 = vmatpush.msrb.mxu0 %v357_v25 }
  0x42   :  { %316 = vmatpush.msrb.mxu3 %v240_v18 }
  0x43   :  { %369 = vmatpush.msrb.mxu0 %v356_v26 }
  0x45   :  { %370 = vmatpush.msrb.mxu0 %v355_v27 }
  0x47   :  { %371 = vmatpush.msrb.mxu0 %v354_v28 }
  0x49   :  { %372 = vmatpush.msrb.mxu0 %v353_v29 }
  0x4b   :  { %373 = vmatpush.msrb.mxu0 %v352_v30 }
  0xb2   :  { %v156_v35 = vpop.f32.mrf.mxu0 }
  0xb3   :  { %v176_v36 = vpop.f32.mrf.mxu1 }
  0xb4   :  { %v177_v37 = vadd.f32 %v176_v36, %v156_v35 }
  0xb6   :  { %v180_v38 = vsel %vm179_vm0, %v177_v37, -1e+30  ;;  %v351_v37 = vld [vmem:[#allocation10 + $0x20] sm:$0xff] }
  0xb7   :  { %v182_v39 = vsel %vm181_vm1, %v180_v38, -inf  ;;  %374 = vmatpush.msrb.mxu0 %v351_v37 }
  0xb8   :  { %183 = vmax.xlane.f32.xlu0 %v182_v39  ;;  %v349_v39 = vld [vmem:[#allocation10 + $0x10] sm:$0xff] }
 0x12b   :  { %v184_v40 = vpop.xlane.xlu0 %183 }
 0x12c   :  { %v185_v41 = vsub.f32 %v180_v38, %v184_v40  ;;  %v350_v38 = vld [vmem:[#allocation10 + $0x18] sm:$0xff]  ;;  %v348_v40 = vld [vmem:[#allocation10 + $0x8] sm:$0xff] }
 0x12d   :  { %375 = vmatpush.msrb.mxu0 %v350_v38 }
 0x12e   :  { %v186_v42 = vmul.f32 1.442695, %v185_v41  ;;  %v347_v41 = vld [vmem:[#allocation10] sm:$0xff] }
 0x12f   :  { %376 = vmatpush.msrb.mxu0 %v349_v39 }
 0x130   :  { %431 = vpow2.f32 %v186_v42 }
 0x131   :  { %377 = vmatpush.msrb.mxu0 %v348_v40 }
 0x133   :  { %378 = vmatpush.msrb.mxu0 %v347_v41 }
 0x136   :  { %v432_v43 = vpop.eup %431 }
 0x137   :  { %v188_v44 = vsel %vm181_vm1, %v432_v43, 0.0 }
 0x138   :  { %189 = vadd.xlane.f32.xlu0 %v188_v44 }
 0x1ab   :  { %v190_v60 = vpop.xlane.xlu0 %189 }
 0x1ac   :  { %433 = vrcp.f32 %v190_v60 }
 0x1b2   :  { %v434_v63 = vpop.eup %433 }
 0x1b3   :  { %v192_v0 = vmul.f32 %v434_v63, %v432_v43 }
 0x1b5   :  { %418 = vmatmul.msk.f32.vlgmr.msra.gmra.mxu2 %vm181_vm1, %v192_v0  ;;  %419 = vmatmul.msk.f32.vlgmr.msra.gmra.mxu3 %vm181_vm1, %v192_v0 }
 0x1b6   :  { %321 = vmatpush.msra.mxu2 %v271_v1 }
 0x1b8   :  { %322 = vmatpush.msra.mxu2 %v270_v2 }
 0x1ba   :  { %323 = vmatpush.msra.mxu2 %v269_v3 }
 0x1bc   :  { %324 = vmatpush.msra.mxu2 %v268_v4 }
 0x1bd   :  { %421 = vmatmul.msk.f32.vlgmr.msrb.gmra.mxu2 %vm273_vm3, %v106_v5 }
 0x1be   :  { %325 = vmatpush.msra.mxu2 %v267_v6 }
 0x1c0   :  { %326 = vmatpush.msra.mxu2 %v266_v7 }
 0x1c2   :  { %327 = vmatpush.msra.mxu2 %v265_v8 }
 0x1c4   :  { %328 = vmatpush.msra.mxu2 %v264_v9 }
 0x1c6   :  { %329 = vmatpush.msra.mxu2 %v263_v10 }
 0x1c8   :  { %330 = vmatpush.msra.mxu2 %v262_v11 }
 0x1ca   :  { %331 = vmatpush.msra.mxu2 %v261_v12 }
 0x1cc   :  { %332 = vmatpush.msra.mxu2 %v260_v13 }
 0x1ce   :  { %333 = vmatpush.msra.mxu2 %v259_v14 }
 0x1d0   :  { %334 = vmatpush.msra.mxu2 %v258_v15 }
 0x1d2   :  { %335 = vmatpush.msra.mxu2 %v257_v17 }
 0x1d4   :  { %336 = vmatpush.msra.mxu2 %v256_v19 }
 0x238   :  { %v215_v31 = vpop.f32.mrf.mxu2  ;;  %v235_v34 = vpop.f32.mrf.mxu3 }
 0x239   :  { %v238_v35 = vmul.f32 %v215_v31, %v763_v32  ;;  %v239_v36 = vmul.f32 %v235_v34, %v768_v33  ;;  %v430_v32 = vld [vmem:[%s887_s7] ss:$0 sm:$0xff]  ;;  %s598_s7 = smov [#allocation11]  }
 0x23a   :  { %s404_s30 = sshll.u32 %s598_s7, 4  ;;  %s405_s30 = int_to_ptr.vmem [resolvable:$true] %s404_s30 }
 0x23b   :  { %317 = vmatmul.f32.vlgmr.msrb.gmra.mxu3 %v238_v35  ;;  %337 = vmatmul.f32.vlgmr.msra.gmra.mxu2 %v239_v36 }
 0x240   :  { %v298_v42 = vpop.f32.mrf.mxu2 }
 0x2be   :  { %v318_v43 = vpop.f32.mrf.mxu3  ;;  %v338_v33 = vpop.f32.mrf.mxu2 }
 0x2bf   :  { %v319_v44 = vadd.f32 %v318_v43, %v298_v42 }
 0x2c1   :  { %v339_v45 = vadd.f32 %v338_v33, %v319_v44 }
 0x2c3   :  { %v345_v46 = vadd.f32 %v430_v32, %v339_v45 }
 0x2c5   :  { %v346_v47 = vmax.f32 %v345_v46, 0.0 }
 0x2c7   :  { %379 = vmatmul.f32.vlgmr.msrb.gmra.mxu0 %v346_v47 }
 0x344   :  { %v380_v50 = vpop.f32.mrf.mxu0 }
 0x345   :  { %v386_v51 = vsel %vm385_vm4, %v380_v50, -1e+30 }
 0x346   :  { %387 = vmax.xlane.f32.xlu1 %v386_v51 }
 0x3b9   :  { %v388_v52 = vpop.xlane.xlu1 %387 }
 0x3ba   :  { %v389_v53 = vsub.f32 %v386_v51, %v388_v52 }
 0x3bc   :  { %v390_v54 = vmul.f32 1.442695, %v389_v53 }
 0x3be   :  { %435 = vpow2.f32 %v390_v54 }
 0x3c4   :  { %v436_v55 = vpop.eup %435 }
 0x3c5   :  { %392 = vadd.xlane.f32.xlu1 %v436_v55 }
 0x438   :  { %v393_v56 = vpop.xlane.xlu1 %392 }
 0x439   :  { %437 = vlog2.f32 %v393_v56 }
 0x43f   :  { %v438_v57 = vpop.eup %437 }
 0x440   :  { %v395_v58 = vmul.f32 0.6931472, %v438_v57 }
 0x442   :  { %v396_v59 = vadd.f32 %v395_v58, %v388_v52 }
 0x444   :  { %v397_v60 = vsub.f32 %v386_v51, %v396_v59 }
 0x446   :  { %398 = vst [vmem:[#allocation11] sm:$0xff] %v397_v60 }
 0x447   :  { %409 = dma.vmem_to_hbm [thread:$0]  %s405_s30, 128, %s407_s4, [#allocation4]  }
 0x448   :  { %589 = dma.done.wait [#allocation4], 128  }
 0x449   :  { %590 = vsyncadd [#allocation4], 4294967168 }
 0x44a   :  { %414 = vsyncpa [#allocation3], 1 }
 0x44b   :  { %415 = vsyncpa [#allocation6], 1 }
 0x44c   :  { %416 = vsyncpa [#allocation9], 1 }
 0x44d   :  { %417 = vsyncpa [#allocation4], 1 }

</bundles_post_ra>
